<compile_context>
chip_gen: v7x
topology: tpu7x:2x2x1
jax: 0.10.0
libtpu: 0.0.40
codegen_flags: <defaults>
</compile_context>

<pallas_src>
import math

import jax
import jax.numpy as jnp
from jax.experimental import pallas as pl
from jax.experimental.pallas import tpu as pltpu

_LOG_EPSILON = -18.4207
_HALF_LOG_2PI = 0.5 * math.log(2.0 * math.pi)

_TM_MAX = 4096          # rows per tile: 4096 * 128 * 4B = 2 MiB f32 per tile
_LANES = 128


def _round_up(n, m):
    return ((n + m - 1) // m) * m


# ---------------------------------------------------------------------------
# plain-JAX glue: truncated normal log-prob (posterior logits over categories)
# ---------------------------------------------------------------------------
def _std_normal_cdf(x):
    return 0.5 * (1.0 + jax.lax.erf(x / jnp.sqrt(2.0).astype(x.dtype)))


def _truncated_normal_log_prob(value, loc, scale, low, high):
    alpha = (low - loc) / scale
    beta = (high - loc) / scale
    log_z = jnp.log(_std_normal_cdf(beta) - _std_normal_cdf(alpha))
    xi = (value - loc) / scale
    log_pdf = -0.5 * xi * xi - _HALF_LOG_2PI - jnp.log(scale)
    return log_pdf - log_z


# ---------------------------------------------------------------------------
# Pallas kernel: lane-dense tiled elementwise multiply  out = x * mask
# ---------------------------------------------------------------------------
def adaptive_size_mul_kernel(mask_ref, x_ref, o_ref):
    # mask_ref: (1, lane)  — broadcast over the row tile
    # x_ref/o_ref: (TM, lane)
    o_ref[...] = (x_ref[...] * mask_ref[...]).astype(o_ref.dtype)


# ---------------------------------------------------------------------------
# Module wrapper
# ---------------------------------------------------------------------------
class AdaptiveSizePallas:
    def __init__(self, min_size, max_size, prior_loc=1.0, prior_scale=1.0,
                 temperature=1.0, prior_temperature=0.001):
        # post_sample @ tril requires len(categories) == max_size, i.e. min_size == 1
        assert min_size == 1, "AdaptiveSize forward requires min_size == 1"
        self.min_size = min_size
        self.max_size = max_size
        self.temperature = jnp.float32(temperature)
        self._tril = jnp.tril(jnp.ones((max_size, max_size), dtype=jnp.float32))
        self._categories = jnp.arange(min_size, max_size + 1, dtype=jnp.float32)
        prior_scale_t = jnp.float32(prior_scale)
        # deterministic "parameters" initialized exactly as the PyTorch __init__ does
        self.var_loc = jnp.float32(prior_loc)
        self.var_spi_scale = jnp.log(jnp.exp(prior_scale_t) - 1.0)
        # TODO(synk): prior / kl_posterior_prior are not part of forward(); not implemented here.

    def _posterior_logits(self):
        loc = jnp.clip(self.var_loc, self.min_size - 1, self.max_size + 1)
        scale = jnp.maximum(jax.nn.softplus(self.var_spi_scale), 0.001)
        logits = _truncated_normal_log_prob(
            self._categories, loc, scale,
            jnp.float32(self.min_size), jnp.float32(self.max_size))
        return jnp.maximum(logits, _LOG_EPSILON)

    def _gumbel(self, key):
        K = self.max_size
        tiny = jnp.finfo(jnp.float32).tiny
        u = jax.random.uniform(key, (K,), dtype=jnp.float32, minval=tiny, maxval=1.0)
        return -jnp.log(-jnp.log(u))

    def _compute_mask(self, key):
        """Gumbel-softmax rsample followed by reversed cumulative sum (== sample @ tril)."""
        logits = self._posterior_logits()
        gumbel = self._gumbel(key)
        sample = jax.nn.softmax((logits + gumbel) / self.temperature)
        return jax.lax.cumsum(sample, axis=0, reverse=True)       # (K,) f32

    def forward(self, x, key):
        K = self.max_size
        assert x.shape[-1] == K, "last dim of input must equal max_size"

        mask = self._compute_mask(key)                            # (K,) f32, plain JAX

        # ---- lane folding: present a 128-wide lane-dense last dim when possible ----
        if _LANES % K == 0:
            lane = _LANES
            mask_lane = jnp.tile(mask, _LANES // K)
        else:
            lane = K
            mask_lane = mask
        mask_lane = mask_lane.reshape(1, lane).astype(jnp.float32)

        orig_shape = x.shape
        x_flat = x.reshape(-1)
        n_elems = x_flat.shape[0]
        rows_raw = -(-n_elems // lane)                            # cdiv

        # ---- pick row tile; keep per-tile footprint ~2 MiB and (8,128)-compliant ----
        if rows_raw <= _TM_MAX:
            rows = _round_up(rows_raw, 8)
            tm = rows
        else:
            tm = _TM_MAX
            rows = _round_up(rows_raw, tm)

        pad = rows * lane - n_elems
        if pad:
            x_flat = jnp.pad(x_flat, (0, pad))
        xm = x_flat.reshape(rows, lane)

        grid = (rows // tm,)
        itemsize = jnp.dtype(x.dtype).itemsize

        out = pl.pallas_call(
            adaptive_size_mul_kernel,
            out_shape=jax.ShapeDtypeStruct((rows, lane), x.dtype),
            grid=grid,
            in_specs=[
                pl.BlockSpec((1, lane), lambda i: (0, 0)),        # tiled mask, resident
                pl.BlockSpec((tm, lane), lambda i: (i, 0)),       # input rows
            ],
            out_specs=pl.BlockSpec((tm, lane), lambda i: (i, 0)),
            compiler_params=pltpu.CompilerParams(
                dimension_semantics=("parallel",)),
            cost_estimate=pl.CostEstimate(
                flops=rows * lane,
                transcendentals=0,
                bytes_accessed=2 * rows * lane * itemsize + lane * 4),
        )(mask_lane, xm)

        return out.reshape(-1)[:n_elems].reshape(orig_shape)

    # pure-JAX reference for correctness checking (uses the original sample @ tril form)
    def forward_ref(self, x, key):
        logits = self._posterior_logits()
        gumbel = self._gumbel(key)
        sample = jax.nn.softmax((logits + gumbel) / self.temperature)
        mask = sample @ self._tril
        return x * mask


if __name__ == "__main__":
    key = jax.random.PRNGKey(0)
    k_x1, k_x2, k_noise = jax.random.split(key, 3)

    min_size, max_size = 1, 32
    layer = AdaptiveSizePallas(min_size, max_size)

    # shape 1: divides cleanly into 128-lane rows
    x1 = jax.random.normal(k_x1, (2, 8, max_size), dtype=jnp.float32)
    out1 = jax.block_until_ready(layer.forward(x1, k_noise))
    ref1 = jax.block_until_ready(layer.forward_ref(x1, k_noise))
    assert out1.shape == x1.shape
    assert jnp.allclose(out1, ref1, rtol=1e-5, atol=1e-5), "mismatch vs reference (shape 1)"

    # shape 2: exercises the pad/trim path (total elements not a multiple of 128*8)
    x2 = jax.random.normal(k_x2, (3, 5, max_size), dtype=jnp.float32)
    out2 = jax.block_until_ready(layer.forward(x2, k_noise))
    ref2 = jax.block_until_ready(layer.forward_ref(x2, k_noise))
    assert out2.shape == x2.shape
    assert jnp.allclose(out2, ref2, rtol=1e-5, atol=1e-5), "mismatch vs reference (shape 2)"

    print("KERNEL_OK")
</pallas_src>

<mosaic_0001>
module attributes {stable_mosaic.version = 11 : i64} {
  func.func @adaptive_size_mul_kernel(%arg0: i32, %arg1: memref<1x128xf32, #tpu.memory_space<vmem>>, %arg2: memref<8x128xf32, #tpu.memory_space<vmem>>, %arg3: memref<8x128xf32, #tpu.memory_space<vmem>>) attributes {dimension_semantics = [#tpu.dimension_semantics<parallel>], iteration_bounds = array<i64: 1>, scalar_prefetch = 0 : i64, scratch_operands = 0 : i64, tpu.core_type = #tpu.core_type<tc>, window_params = [{pipeline_mode = #tpu.pipeline_mode<synchronous>, transform_indices = @transform_0, window_bounds = array<i64: 1, 128>}, {transform_indices = @transform_1, window_bounds = array<i64: 8, 128>}, {transform_indices = @transform_2, window_bounds = array<i64: 8, 128>}]} {
    %c0 = arith.constant 0 : index
    %c0_0 = arith.constant 0 : index
    %0 = vector.load %arg2[%c0, %c0_0] : memref<8x128xf32, #tpu.memory_space<vmem>>, vector<8x128xf32>
    %c0_1 = arith.constant 0 : index
    %c0_2 = arith.constant 0 : index
    %1 = vector.load %arg1[%c0_1, %c0_2] : memref<1x128xf32, #tpu.memory_space<vmem>>, vector<1x128xf32>
    %2 = vector.broadcast %1 : vector<1x128xf32> to vector<8x128xf32>
    %3 = arith.mulf %0, %2 : vector<8x128xf32>
    %c0_3 = arith.constant 0 : index
    %c0_4 = arith.constant 0 : index
    %4 = vector.load %arg3[%c0_3, %c0_4] : memref<8x128xf32, #tpu.memory_space<vmem>>, vector<8x128xf32>
    tpu.vector_store %arg3[%c0_3, %c0_4], %3 {strides = array<i32>} : memref<8x128xf32, #tpu.memory_space<vmem>>, vector<8x128xf32>,
    return
  }
  func.func @transform_0(%arg0: i32) -> (i32, i32) {
    %c0_i32 = arith.constant 0 : i32
    %c0_i32_0 = arith.constant 0 : i32
    %c0_i32_1 = arith.constant 0 : i32
    return %c0_i32, %c0_i32_0 : i32, i32
  }
  func.func @transform_1(%arg0: i32) -> (i32, i32) {
    %c0_i32 = arith.constant 0 : i32
    %c0_i32_0 = arith.constant 0 : i32
    return %arg0, %c0_i32 : i32, i32
  }
  func.func @transform_2(%arg0: i32) -> (i32, i32) {
    %c0_i32 = arith.constant 0 : i32
    %c0_i32_0 = arith.constant 0 : i32
    return %arg0, %c0_i32 : i32, i32
  }
}

</mosaic_0001>

<bundles_post_ra>
// kernel: tpu_custom_call.1
= control target key start
LH: loop header
LB: loop body
LE: loop exit
PB: predicated region body
PF: predicated region fallthrough
CT: control target
= control target key end

     0   :  { %7 = vsyncpa [#allocation3], 0  ;;  %s192_s0 = inlined_call_operand.hbm [shape: f32[1,128], index: 0, kind: input, shape index: {}]   ;;  %s193_s1 = inlined_call_operand.hbm [shape: f32[8,128], index: 1, kind: input, shape index: {}]   ;;  %s194_s2 = inlined_call_operand.hbm [shape: f32[8,128], index: 2, kind: output, shape index: {}]  }
   0x1   :  { %8 = vsyncpa [#allocation6], 0 }
   0x2   :  { %9 = vsyncpa [#allocation4], 0  ;;  %s138_s9 = smov [#allocation2]   ;;  %s139_s11 = smov [#allocation5]  }
   0x3   :  { %s16_s10 = sshll.u32 %s138_s9, 4  ;;  %s26_s12 = sshll.u32 %s139_s11, 4  ;;  %s17_s10 = int_to_ptr.vmem [resolvable:$true] %s16_s10  ;;  %s27_s12 = int_to_ptr.vmem [resolvable:$true] %s26_s12 }
   0x4   :  { %s66_s15 = scalar_lea.hbm %s192_s0, 16 }
   0x5   :  { %p67_p0 = scmp.ne.s32.totalorder %s192_s0, %s66_s15  ;;  %p70_p1 = scmp.lt.u32.totalorder %s66_s15, %s192_s0 }
   0x7   :  { %p72_p2 = pnand %p70_p1, %p67_p0 }
   0x9   :  { %75 = shalt.err (!%p72_p2)
}
   0xa   :  { %s76_s20 = scalar_lea.vmem %s17_s10, 16  ;;  %s80_s21 = scalar_lea.vmem %s17_s10, 32 }
   0xb   :  { %p77_p3 = scmp.ne.s32.totalorder %s17_s10, %s76_s20  ;;  %p81_p4 = scmp.lt.s32.totalorder %s17_s10, %s17_s10 }
   0xc   :  { %p82_p5 = scmp.lt.s32.totalorder %s80_s21, %s76_s20 }
   0xe   :  { %p83_p6 = por %p82_p5, %p81_p4 }
  0x10   :  { %p84_p7 = pnand %p83_p6, %p77_p3 }
  0x12   :  { %87 = shalt.err (!%p84_p7)
}
  0x13   :  { %19 = dma.hbm_to_vmem [thread:$0]  %s192_s0, 16, %s17_s10, [#allocation3]  }
  0x14   :  { %s88_s26 = scalar_lea.hbm %s193_s1, 128 }
  0x15   :  { %p89_p8 = scmp.ne.s32.totalorder %s193_s1, %s88_s26  ;;  %p92_p9 = scmp.lt.u32.totalorder %s88_s26, %s193_s1 }
  0x17   :  { %p94_p10 = pnand %p92_p9, %p89_p8 }
  0x19   :  { %97 = shalt.err (!%p94_p10)
}
  0x1a   :  { %s98_s3 = scalar_lea.vmem %s27_s12, 128  ;;  %p103_p12 = scmp.lt.s32.totalorder %s27_s12, %s27_s12 }
  0x1b   :  { %p99_p11 = scmp.ne.s32.totalorder %s27_s12, %s98_s3  ;;  %p104_p13 = scmp.lt.s32.totalorder %s98_s3, %s98_s3 }
  0x1d   :  { %p105_p0 = por %p104_p13, %p103_p12 }
  0x1f   :  { %p106_p1 = pnand %p105_p0, %p99_p11 }
  0x21   :  { %109 = shalt.err (!%p106_p1)
}
  0x22   :  { %29 = dma.hbm_to_vmem [thread:$0]  %s193_s1, 128, %s27_s12, [#allocation6]  }
  0x23   :  { %132 = dma.done.wait [#allocation3], 16  }
  0x24   :  { %133 = vsyncadd [#allocation3], 4294967280 }
  0x25   :  { %134 = dma.done.wait [#allocation6], 128  }
  0x26   :  { %135 = vsyncadd [#allocation6], 4294967168  ;;  %s140_s5 = smov [#allocation7]   ;;  %v36_v0 = vld [vmem:[#allocation5] sm:$0xff]  ;;  %v62_v1 = vld [vmem:[#allocation2] ss:$0 sm:$0xff] }
  0x27   :  { %s52_s6 = sshll.u32 %s140_s5, 4  ;;  %v44_v2 = vmul.f32 %v62_v1, %v36_v0  ;;  %s53_s6 = int_to_ptr.vmem [resolvable:$true] %s52_s6 }
  0x28   :  { %s110_s7 = scalar_lea.vmem %s53_s6, 128  ;;  %p115_p3 = scmp.lt.s32.totalorder %s53_s6, %s53_s6 }
  0x29   :  { %45 = vst [vmem:[#allocation7] sm:$0xff] %v44_v2  ;;  %p111_p2 = scmp.ne.s32.totalorder %s53_s6, %s110_s7  ;;  %p116_p4 = scmp.lt.s32.totalorder %s110_s7, %s110_s7 }
  0x2b   :  { %p117_p5 = por %p116_p4, %p115_p3 }
  0x2d   :  { %p118_p6 = pnand %p117_p5, %p111_p2 }
  0x2f   :  { %121 = shalt.err (!%p118_p6)
}
  0x30   :  { %s122_s9 = scalar_lea.hbm %s194_s2, 128 }
  0x31   :  { %p123_p7 = scmp.ne.s32.totalorder %s194_s2, %s122_s9  ;;  %p126_p8 = scmp.lt.u32.totalorder %s122_s9, %s194_s2 }
  0x33   :  { %p128_p9 = pnand %p126_p8, %p123_p7 }
  0x35   :  { %131 = shalt.err (!%p128_p9)
}
  0x36   :  { %55 = dma.vmem_to_hbm [thread:$0]  %s53_s6, 128, %s194_s2, [#allocation4]  }
  0x37   :  { %136 = dma.done.wait [#allocation4], 128  }
  0x38   :  { %137 = vsyncadd [#allocation4], 4294967168 }
  0x39   :  { %59 = vsyncpa [#allocation3], 1 }
  0x3a   :  { %60 = vsyncpa [#allocation6], 1 }
  0x3b   :  { %61 = vsyncpa [#allocation4], 1 }

</bundles_post_ra>
